<compile_context>
chip_gen: v5e
topology: v5e:2x2
jax: 0.10.0
libtpu: 0.0.40
codegen_flags: <defaults>
</compile_context>

<pallas_src>
import functools
import math

import jax
import jax.numpy as jnp
from jax.experimental import pallas as pl
from jax.experimental.pallas import tpu as pltpu


def _round_up(x, m):
    return ((x + m - 1) // m) * m


def _cdiv(a, b):
    return -(-a // b)


def _mlp_readout_kernel(x_ref, w0_ref, b0_ref, w1_ref, b1_ref, w2_ref, b2_ref,
                        o_ref):
    compute_dtype = w0_ref.dtype
    # Layer 0: Linear + ReLU (f32 accumulation on the MXU).
    h = jnp.dot(x_ref[...], w0_ref[...], preferred_element_type=jnp.float32)
    h = jnp.maximum(h + b0_ref[...], 0.0).astype(compute_dtype)
    # Layer 1: Linear + ReLU.
    h = jnp.dot(h, w1_ref[...], preferred_element_type=jnp.float32)
    h = jnp.maximum(h + b1_ref[...], 0.0).astype(compute_dtype)
    # Layer 2 (final): Linear, no activation.
    y = jnp.dot(h, w2_ref[...], preferred_element_type=jnp.float32)
    o_ref[...] = (y + b2_ref[...]).astype(o_ref.dtype)


def _resident(shape):
    # Constant index_map -> fetched once, stays resident across the grid.
    # Buffered(1): no second pipeline buffer for data whose block never moves.
    return pl.BlockSpec(shape, lambda i: (0,) * len(shape),
                        pipeline_mode=pl.Buffered(1))


def pack_mlp_readout_params(params, *, dtype=jnp.float32,
                            weight_vmem_budget_bytes=12 * 1024 * 1024):
    """One-time packing of MLPReadout params into lane-dense kernel operands.

    params: dict with w{0,1,2} of shape (in_dim, out_dim) (nn.Linear weight
    stored transposed) and b{0,1,2} of shape (1, out_dim).

    Returns a dict with the (possibly block-diagonal) weights, tiled f32
    biases and the static pack factor `p`.  With p > 1 the weights are
    kron(I_p, W) so the output slab's last dim is a multiple of 128 lanes.
    If the p^2-scaled kron weights would exceed `weight_vmem_budget_bytes`
    (e.g. d_out in {1,2} with larger input_dim) we fall back to p=1: plain
    weights and masked output stores -- same math, no OOM hazard.
    """
    w0, b0 = params["w0"], params["b0"]
    w1, b1 = params["w1"], params["b1"]
    w2, b2 = params["w2"], params["b2"]
    d_in, d_h0 = w0.shape
    d_h1, d_out = w2.shape
    itemsize = jnp.dtype(dtype).itemsize

    # Smallest p with (p * d_out) % 128 == 0 -> lane-dense output slab.
    p = 128 // math.gcd(128, d_out)
    kron_bytes = p * p * (d_in * d_h0 + d_h0 * d_h1 + d_h1 * d_out) * itemsize
    if kron_bytes > weight_vmem_budget_bytes:
        p = 1  # fallback: plain weights, masked output stores, still exact.

    if p == 1:
        w0b, w1b, w2b = (w.astype(dtype) for w in (w0, w1, w2))
        b0b, b1b, b2b = (b.astype(jnp.float32) for b in (b0, b1, b2))
    else:
        eye = jnp.eye(p, dtype=dtype)
        w0b = jnp.kron(eye, w0.astype(dtype))   # (p*d_in , p*d_h0)
        w1b = jnp.kron(eye, w1.astype(dtype))   # (p*d_h0 , p*d_h1)
        w2b = jnp.kron(eye, w2.astype(dtype))   # (p*d_h1 , p*d_out)
        b0b = jnp.tile(b0.astype(jnp.float32), (1, p))
        b1b = jnp.tile(b1.astype(jnp.float32), (1, p))
        b2b = jnp.tile(b2.astype(jnp.float32), (1, p))

    return {"p": int(p), "d_out": int(d_out),
            "w0": w0b, "b0": b0b, "w1": w1b, "b1": b1b, "w2": w2b, "b2": b2b}


@functools.partial(jax.jit, static_argnames=("p", "d_out", "block_rows"))
def _mlp_readout_call(x, w0b, b0b, w1b, b1b, w2b, b2b, *, p, d_out,
                      block_rows):
    n, _ = x.shape
    dtype = w0b.dtype
    if x.dtype != dtype:
        x = x.astype(dtype)
    itemsize = jnp.dtype(dtype).itemsize
    pd_in, pd_h0 = w0b.shape
    pd_h1, pd_out = w2b.shape
    assert pd_out == p * d_out

    # Pad rows only to a multiple of p (needed for the free slab reshape).
    # Grid divisibility is handled by a cdiv grid + Pallas boundary masking,
    # so large N never pays a full-array padding round trip through HBM.
    n_pad = _round_up(n, p)
    if n_pad != n:
        x = jnp.pad(x, ((0, n_pad - n), (0, 0)))
    slab_rows = n_pad // p
    x_slab = x.reshape(slab_rows, pd_in)

    # Slab-row tile. block_rows=8192, p=16 -> block_slab=512 rows/step: the
    # matmul M dim is >=256 and per-step DMA is large enough to hide the
    # ~0.35us/step pipeline overhead, while per-step VMEM stays far under the
    # v7x 64 MiB budget at these feature dims.
    block_slab = min(max(block_rows // p, 8), _round_up(slab_rows, 8))
    block_slab = _round_up(block_slab, 8)
    # v7x has 2 TensorCores: give the "parallel" grid >= 2 steps whenever
    # there is enough work to split (one extra cheap step on v5e/v6e).
    if slab_rows > 8 and _cdiv(slab_rows, block_slab) < 2:
        block_slab = _round_up(_cdiv(slab_rows, 2), 8)
    grid = (_cdiv(slab_rows, block_slab),)

    flops = 2 * slab_rows * (pd_in * pd_h0 + pd_h0 * pd_h1 + pd_h1 * pd_out)
    weight_bytes = ((w0b.size + w1b.size + w2b.size) * itemsize
                    + (b0b.size + b1b.size + b2b.size) * 4)
    bytes_accessed = slab_rows * (pd_in + pd_out) * itemsize + weight_bytes

    out_slab = pl.pallas_call(
        _mlp_readout_kernel,
        out_shape=jax.ShapeDtypeStruct((slab_rows, pd_out), dtype),
        grid_spec=pltpu.PrefetchScalarGridSpec(
            num_scalar_prefetch=0,
            grid=grid,
            in_specs=[
                pl.BlockSpec((block_slab, pd_in), lambda i: (i, 0)),  # x slab
                _resident((pd_in, pd_h0)),    # w0 (block-diagonal)
                _resident((1, pd_h0)),        # b0 (tiled)
                _resident((pd_h0, pd_h1)),    # w1
                _resident((1, pd_h1)),        # b1
                _resident((pd_h1, pd_out)),   # w2
                _resident((1, pd_out)),       # b2
            ],
            out_specs=pl.BlockSpec((block_slab, pd_out), lambda i: (i, 0)),
        ),
        compiler_params=pltpu.CompilerParams(
            dimension_semantics=("parallel",),
            # <= ~48 MiB leaves compiler scratch headroom on v7x's 64 MiB VMEM
            # and is far below v5e/v6e's 128 MiB.
            vmem_limit_bytes=48 * 1024 * 1024,
        ),
        cost_estimate=pl.CostEstimate(
            flops=int(flops),
            transcendentals=0,
            bytes_accessed=int(bytes_accessed),
        ),
    )(x_slab, w0b, b0b, w1b, b1b, w2b, b2b)

    y = out_slab.reshape(n_pad, d_out)
    return y[:n] if n_pad != n else y


def mlp_readout(x, packed, *, block_rows=8192):
    """Fused MLPReadout forward.

    x:      (N, input_dim); cast to the packed compute dtype if it differs.
    packed: output of pack_mlp_readout_params (precomputed once).
    block_rows: node rows per grid step.  >=4096 keeps the MXU M dim >=256;
      8192-16384 is comfortably within VMEM on v5e/v6e/v7x at these dims.
    """
    return _mlp_readout_call(
        x, packed["w0"], packed["b0"], packed["w1"], packed["b1"],
        packed["w2"], packed["b2"],
        p=packed["p"], d_out=packed["d_out"], block_rows=int(block_rows))


def init_mlp_readout_params(key, input_dim, output_dim, L=2):
    """Deterministic init matching nn.Linear shapes (weights stored transposed)."""
    dims = [input_dim // (2 ** l) for l in range(L + 1)] + [output_dim]
    params = {}
    for l in range(L + 1):
        fan_in, fan_out = dims[l], dims[l + 1]
        key, kw, kb = jax.random.split(key, 3)
        bound = 1.0 / jnp.sqrt(fan_in)
        # nn.Linear weight is (out, in); we store its transpose (in, out).
        params[f"w{l}"] = jax.random.uniform(
            kw, (fan_in, fan_out), jnp.float32, -bound, bound)
        params[f"b{l}"] = jax.random.uniform(
            kb, (1, fan_out), jnp.float32, -bound, bound)
    return params


def _reference(x, params):
    y = jnp.maximum(x @ params["w0"] + params["b0"], 0.0)
    y = jnp.maximum(y @ params["w1"] + params["b1"], 0.0)
    return y @ params["w2"] + params["b2"]


if __name__ == "__main__":
    key = jax.random.PRNGKey(0)
    k_x, k_p, k_x2, k_x3 = jax.random.split(key, 4)

    N, INPUT_DIM, OUTPUT_DIM = 128, 32, 8  # small GatedGCN readout shapes
    params = init_mlp_readout_params(k_p, INPUT_DIM, OUTPUT_DIM, L=2)

    packed_f32 = pack_mlp_readout_params(params, dtype=jnp.float32)
    assert packed_f32["p"] == 16  # lane-dense packing active

    # f32, row count divisible by the pack factor.
    x = jax.random.normal(k_x, (N, INPUT_DIM), dtype=jnp.float32)
    out = jax.block_until_ready(mlp_readout(x, packed_f32))
    ref = _reference(x, params)
    assert out.shape == (N, OUTPUT_DIM)
    assert jnp.allclose(out, ref, atol=1e-5, rtol=1e-5)

    # Ragged row count: tiny pad-to-p plus a partial (masked) last block.
    x2 = jax.random.normal(k_x2, (100, INPUT_DIM), dtype=jnp.float32)
    out2 = jax.block_until_ready(mlp_readout(x2, packed_f32))
    ref2 = _reference(x2, params)
    assert out2.shape == (100, OUTPUT_DIM)
    assert jnp.allclose(out2, ref2, atol=1e-5, rtol=1e-5)

    # Larger ragged N: multi-step grid (>=2 steps -> both v7x TensorCores)
    # with a partial final block.
    x3 = jax.random.normal(k_x3, (1000, INPUT_DIM), dtype=jnp.float32)
    out3 = jax.block_until_ready(mlp_readout(x3, packed_f32))
    ref3 = _reference(x3, params)
    assert out3.shape == (1000, OUTPUT_DIM)
    assert jnp.allclose(out3, ref3, atol=1e-5, rtol=1e-5)

    # bf16 I/O path (halves HBM traffic on v6e/v7x; accumulation stays f32).
    packed_bf16 = pack_mlp_readout_params(params, dtype=jnp.bfloat16)
    x_bf = x.astype(jnp.bfloat16)
    out_bf = jax.block_until_ready(mlp_readout(x_bf, packed_bf16))
    params_q = {k: (v.astype(jnp.bfloat16).astype(jnp.float32)
                    if k.startswith("w") else v) for k, v in params.items()}
    ref_bf = _reference(x_bf.astype(jnp.float32), params_q)
    assert out_bf.shape == (N, OUTPUT_DIM) and out_bf.dtype == jnp.bfloat16
    assert jnp.allclose(out_bf.astype(jnp.float32), ref_bf, atol=1e-1, rtol=1e-1)

    # Pack-factor guard: a tiny budget forces the p=1 fallback (plain weights,
    # masked output stores) -- same math, still correct, no VMEM blow-up.
    packed_p1 = pack_mlp_readout_params(params, dtype=jnp.float32,
                                        weight_vmem_budget_bytes=1024)
    assert packed_p1["p"] == 1
    out_p1 = jax.block_until_ready(mlp_readout(x2, packed_p1))
    assert out_p1.shape == (100, OUTPUT_DIM)
    assert jnp.allclose(out_p1, ref2, atol=1e-5, rtol=1e-5)

    print("KERNEL_OK")
</pallas_src>

<mosaic_0001>
module attributes {stable_mosaic.version = 11 : i64} {
  func.func @_mlp_readout_kernel(%arg0: i32, %arg1: memref<8x512xf32, #tpu.memory_space<vmem>>, %arg2: memref<512x256xf32, #tpu.memory_space<vmem>>, %arg3: memref<1x256xf32, #tpu.memory_space<vmem>>, %arg4: memref<256x128xf32, #tpu.memory_space<vmem>>, %arg5: memref<1x128xf32, #tpu.memory_space<vmem>>, %arg6: memref<128x128xf32, #tpu.memory_space<vmem>>, %arg7: memref<1x128xf32, #tpu.memory_space<vmem>>, %arg8: memref<8x128xf32, #tpu.memory_space<vmem>>) attributes {dimension_semantics = [#tpu.dimension_semantics<parallel>], iteration_bounds = array<i64: 1>, scalar_prefetch = 0 : i64, scratch_operands = 0 : i64, tpu.core_type = #tpu.core_type<tc>, window_params = [{transform_indices = @transform_0, window_bounds = array<i64: 8, 512>}, {pipeline_mode = #tpu.pipeline_mode<synchronous>, transform_indices = @transform_1, window_bounds = array<i64: 512, 256>}, {pipeline_mode = #tpu.pipeline_mode<synchronous>, transform_indices = @transform_2, window_bounds = array<i64: 1, 256>}, {pipeline_mode = #tpu.pipeline_mode<synchronous>, transform_indices = @transform_3, window_bounds = array<i64: 256, 128>}, {pipeline_mode = #tpu.pipeline_mode<synchronous>, transform_indices = @transform_4, window_bounds = array<i64: 1, 128>}, {pipeline_mode = #tpu.pipeline_mode<synchronous>, transform_indices = @transform_5, window_bounds = array<i64: 128, 128>}, {pipeline_mode = #tpu.pipeline_mode<synchronous>, transform_indices = @transform_6, window_bounds = array<i64: 1, 128>}, {transform_indices = @transform_7, window_bounds = array<i64: 8, 128>}]} {
    %c0 = arith.constant 0 : index
    %c0_0 = arith.constant 0 : index
    %0 = vector.load %arg1[%c0, %c0_0] : memref<8x512xf32, #tpu.memory_space<vmem>>, vector<8x512xf32>
    %c0_1 = arith.constant 0 : index
    %c0_2 = arith.constant 0 : index
    %1 = vector.load %arg2[%c0_1, %c0_2] : memref<512x256xf32, #tpu.memory_space<vmem>>, vector<512x256xf32>
    %cst = arith.constant dense<0.000000e+00> : vector<8x256xf32>
    %2 = tpu.matmul %0, %1, %cst {dimension_numbers = #tpu.dot_dimension_numbers<[1], [0], [0], [1], [0, 0, 1, 1], [], []>} : vector<8x512xf32>, vector<512x256xf32>, vector<8x256xf32> -> vector<8x256xf32>
    %c0_3 = arith.constant 0 : index
    %c0_4 = arith.constant 0 : index
    %3 = vector.load %arg3[%c0_3, %c0_4] : memref<1x256xf32, #tpu.memory_space<vmem>>, vector<1x256xf32>
    %4 = vector.broadcast %3 : vector<1x256xf32> to vector<8x256xf32>
    %5 = arith.addf %2, %4 : vector<8x256xf32>
    %cst_5 = arith.constant 0.000000e+00 : f32
    %6 = vector.broadcast %cst_5 : f32 to vector<8x256xf32>
    %7 = arith.maximumf %5, %6 : vector<8x256xf32>
    %c0_6 = arith.constant 0 : index
    %c0_7 = arith.constant 0 : index
    %8 = vector.load %arg4[%c0_6, %c0_7] : memref<256x128xf32, #tpu.memory_space<vmem>>, vector<256x128xf32>
    %cst_8 = arith.constant dense<0.000000e+00> : vector<8x128xf32>
    %9 = tpu.matmul %7, %8, %cst_8 {dimension_numbers = #tpu.dot_dimension_numbers<[1], [0], [0], [1], [0, 0, 1, 1], [], []>} : vector<8x256xf32>, vector<256x128xf32>, vector<8x128xf32> -> vector<8x128xf32>
    %c0_9 = arith.constant 0 : index
    %c0_10 = arith.constant 0 : index
    %10 = vector.load %arg5[%c0_9, %c0_10] : memref<1x128xf32, #tpu.memory_space<vmem>>, vector<1x128xf32>
    %11 = vector.broadcast %10 : vector<1x128xf32> to vector<8x128xf32>
    %12 = arith.addf %9, %11 : vector<8x128xf32>
    %cst_11 = arith.constant 0.000000e+00 : f32
    %13 = vector.broadcast %cst_11 : f32 to vector<8x128xf32>
    %14 = arith.maximumf %12, %13 : vector<8x128xf32>
    %c0_12 = arith.constant 0 : index
    %c0_13 = arith.constant 0 : index
    %15 = vector.load %arg6[%c0_12, %c0_13] : memref<128x128xf32, #tpu.memory_space<vmem>>, vector<128x128xf32>
    %cst_14 = arith.constant dense<0.000000e+00> : vector<8x128xf32>
    %16 = tpu.matmul %14, %15, %cst_14 {dimension_numbers = #tpu.dot_dimension_numbers<[1], [0], [0], [1], [0, 0, 1, 1], [], []>} : vector<8x128xf32>, vector<128x128xf32>, vector<8x128xf32> -> vector<8x128xf32>
    %c0_15 = arith.constant 0 : index
    %c0_16 = arith.constant 0 : index
    %17 = vector.load %arg7[%c0_15, %c0_16] : memref<1x128xf32, #tpu.memory_space<vmem>>, vector<1x128xf32>
    %18 = vector.broadcast %17 : vector<1x128xf32> to vector<8x128xf32>
    %19 = arith.addf %16, %18 : vector<8x128xf32>
    %c0_17 = arith.constant 0 : index
    %c0_18 = arith.constant 0 : index
    %20 = vector.load %arg8[%c0_17, %c0_18] : memref<8x128xf32, #tpu.memory_space<vmem>>, vector<8x128xf32>
    tpu.vector_store %arg8[%c0_17, %c0_18], %19 {strides = array<i32>} : memref<8x128xf32, #tpu.memory_space<vmem>>, vector<8x128xf32>,
    return
  }
  func.func @transform_0(%arg0: i32) -> (i32, i32) {
    %c0_i32 = arith.constant 0 : i32
    %c0_i32_0 = arith.constant 0 : i32
    return %arg0, %c0_i32 : i32, i32
  }
  func.func @transform_1(%arg0: i32) -> (i32, i32) {
    %c0_i32 = arith.constant 0 : i32
    %c0_i32_0 = arith.constant 0 : i32
    %c0_i32_1 = arith.constant 0 : i32
    return %c0_i32, %c0_i32_0 : i32, i32
  }
  func.func @transform_2(%arg0: i32) -> (i32, i32) {
    %c0_i32 = arith.constant 0 : i32
    %c0_i32_0 = arith.constant 0 : i32
    %c0_i32_1 = arith.constant 0 : i32
    return %c0_i32, %c0_i32_0 : i32, i32
  }
  func.func @transform_3(%arg0: i32) -> (i32, i32) {
    %c0_i32 = arith.constant 0 : i32
    %c0_i32_0 = arith.constant 0 : i32
    %c0_i32_1 = arith.constant 0 : i32
    return %c0_i32, %c0_i32_0 : i32, i32
  }
  func.func @transform_4(%arg0: i32) -> (i32, i32) {
    %c0_i32 = arith.constant 0 : i32
    %c0_i32_0 = arith.constant 0 : i32
    %c0_i32_1 = arith.constant 0 : i32
    return %c0_i32, %c0_i32_0 : i32, i32
  }
  func.func @transform_5(%arg0: i32) -> (i32, i32) {
    %c0_i32 = arith.constant 0 : i32
    %c0_i32_0 = arith.constant 0 : i32
    %c0_i32_1 = arith.constant 0 : i32
    return %c0_i32, %c0_i32_0 : i32, i32
  }
  func.func @transform_6(%arg0: i32) -> (i32, i32) {
    %c0_i32 = arith.constant 0 : i32
    %c0_i32_0 = arith.constant 0 : i32
    %c0_i32_1 = arith.constant 0 : i32
    return %c0_i32, %c0_i32_0 : i32, i32
  }
  func.func @transform_7(%arg0: i32) -> (i32, i32) {
    %c0_i32 = arith.constant 0 : i32
    %c0_i32_0 = arith.constant 0 : i32
    return %arg0, %c0_i32 : i32, i32
  }
}

</mosaic_0001>

<bundles_post_ra>
// kernel: _mlp_readout_call.1
= control target key start
LH: loop header
LB: loop body
LE: loop exit
PB: predicated region body
PF: predicated region fallthrough
CT: control target
= control target key end

     0   :  { %12 = vsyncpa [#allocation3], 0  ;;  %s714_s0 = inlined_call_operand.vmem [shape: f32[8,512], index: 0, kind: input, shape index: {}]   ;;  %s715_s1 = inlined_call_operand.hbm [shape: f32[512,256], index: 1, kind: input, shape index: {}]   ;;  %s716_s2 = inlined_call_operand.vmem [shape: f32[1,256], index: 2, kind: input, shape index: {}]   ;;  %s717_s3 = inlined_call_operand.vmem [shape: f32[256,128], index: 3, kind: input, shape index: {}]   ;;  %s718_s4 = inlined_call_operand.vmem [shape: f32[1,128], index: 4, kind: input, shape index: {}]   ;;  %s719_s5 = inlined_call_operand.hbm [shape: f32[128,128], index: 5, kind: input, shape index: {}]   ;;  %s720_s6 = inlined_call_operand.vmem [shape: f32[1,128], index: 6, kind: input, shape index: {}]   ;;  %s721_s7 = inlined_call_operand.vmem [shape: f32[8,128], index: 7, kind: output, shape index: {}]  }
   0x1   :  { %s20_s26 = sshll.u32 %s715_s1, 4  ;;  %s21_s26 = int_to_ptr.hbm [resolvable:$true] %s20_s26 }
   0x2   :  { %13 = vsyncpa [#allocation5], 0  ;;  %s542_s27 = smov [#allocation2]   ;;  %s39_s8 = sshll.u32 %s719_s5, 4  ;;  %s40_s8 = int_to_ptr.hbm [resolvable:$true] %s39_s8 }
   0x3   :  { %s22_s28 = sshll.u32 %s542_s27, 4  ;;  %s543_s9 = smov 256   ;;  %s23_s28 = int_to_ptr.vmem [resolvable:$true] %s22_s28 }
   0x4   :  { %s544_s10 = smov 16   ;;  %s545_s11 = smov [#allocation4]  }
   0x5   :  { %28 = dma.hbm_to_vmem [thread:$0]  %s21_s26, 16384, %s23_s28, [#allocation3], %s543_s9, %s543_s9, %s544_s10  }
   0x6   :  { %s41_s12 = sshll.u32 %s545_s11, 4  ;;  %s546_s13 = smov 128   ;;  %s42_s12 = int_to_ptr.vmem [resolvable:$true] %s41_s12 }
   0x7   :  { %s547_s14 = smov 8  }
   0x8   :  { %47 = dma.hbm_to_vmem [thread:$0]  %s40_s8, 2048, %s42_s12, [#allocation5], %s546_s13, %s546_s13, %s547_s14  }
   0x9   :  { %538 = dma.done.wait [#allocation3], 16384  }
   0xa   :  { %539 = vsyncadd [#allocation3], 4294950912 }
   0xb   :  { %540 = dma.done.wait [#allocation5], 2048  }
   0xc   :  { %541 = vsyncadd [#allocation5], 4294965248  ;;  %v156_v0 = vld [vmem:[#allocation2 + $0x2f0] sm:$0xff]  ;;  %v154_v2 = vld [vmem:[#allocation2 + $0x2e0] sm:$0xff] }
   0xd   :  { %v92_v1 = vld [vmem:[#allocation2 + $0xf0] sm:$0xff]  ;;  %236 = vmatpush.msra.mxu2 %v156_v0  ;;  %v90_v4 = vld [vmem:[#allocation2 + $0xe0] sm:$0xff]  ;;  %v157_v62 = vld [vmem:[#allocation2 + $0x2f8] sm:$0xff] }
   0xe   :  { %196 = vmatpush.msra.mxu0 %v92_v1  ;;  %v188_v3 = vld [vmem:[#allocation2 + $0x3f0] sm:$0xff]  ;;  %v186_v7 = vld [vmem:[#allocation2 + $0x3e0] sm:$0xff]  ;;  %v93_v0 = vld [vmem:[#allocation2 + $0xf8] sm:$0xff] }
   0xf   :  { %v124_v5 = vld [vmem:[#allocation2 + $0x1f0] sm:$0xff]  ;;  %256 = vmatpush.msra.mxu3 %v188_v3  ;;  %237 = vmatpush.msra.mxu2 %v154_v2  ;;  %v122_v9 = vld [vmem:[#allocation2 + $0x1e0] sm:$0xff]  ;;  %v189_v1 = vld [vmem:[#allocation2 + $0x3f8] sm:$0xff] }
  0x10   :  { %216 = vmatpush.msra.mxu1 %v124_v5  ;;  %v152_v6 = vld [vmem:[#allocation2 + $0x2d0] sm:$0xff]  ;;  %197 = vmatpush.msra.mxu0 %v90_v4  ;;  %v150_v11 = vld [vmem:[#allocation2 + $0x2c0] sm:$0xff]  ;;  %v155_v2 = vld [vmem:[#allocation2 + $0x2e8] sm:$0xff] }
  0x11   :  { %v88_v8 = vld [vmem:[#allocation2 + $0xd0] sm:$0xff]  ;;  %257 = vmatpush.msra.mxu3 %v186_v7  ;;  %v86_v12 = vld [vmem:[#allocation2 + $0xc0] sm:$0xff]  ;;  %238 = vmatpush.msra.mxu2 %v152_v6  ;;  %v91_v4 = vld [vmem:[#allocation2 + $0xe8] sm:$0xff] }
  0x12   :  { %v184_v10 = vld [vmem:[#allocation2 + $0x3d0] sm:$0xff]  ;;  %217 = vmatpush.msra.mxu1 %v122_v9  ;;  %198 = vmatpush.msra.mxu0 %v88_v8  ;;  %v182_v14 = vld [vmem:[#allocation2 + $0x3c0] sm:$0xff]  ;;  %v125_v5 = vld [vmem:[#allocation2 + $0x1f8] sm:$0xff] }
  0x13   :  { %v120_v13 = vld [vmem:[#allocation2 + $0x1d0] sm:$0xff]  ;;  %v118_v15 = vld [vmem:[#allocation2 + $0x1c0] sm:$0xff]  ;;  %258 = vmatpush.msra.mxu3 %v184_v10  ;;  %239 = vmatpush.msra.mxu2 %v150_v11  ;;  %v153_v6 = vld [vmem:[#allocation2 + $0x2d8] sm:$0xff] }
  0x14   :  { %218 = vmatpush.msra.mxu1 %v120_v13  ;;  %v148_v16 = vld [vmem:[#allocation2 + $0x2b0] sm:$0xff]  ;;  %199 = vmatpush.msra.mxu0 %v86_v12  ;;  %v146_v20 = vld [vmem:[#allocation2 + $0x2a0] sm:$0xff]  ;;  %v187_v7 = vld [vmem:[#allocation2 + $0x3e8] sm:$0xff] }
  0x15   :  { %v84_v17 = vld [vmem:[#allocation2 + $0xb0] sm:$0xff]  ;;  %259 = vmatpush.msra.mxu3 %v182_v14  ;;  %v82_v21 = vld [vmem:[#allocation2 + $0xa0] sm:$0xff]  ;;  %240 = vmatpush.msra.mxu2 %v148_v16  ;;  %v89_v8 = vld [vmem:[#allocation2 + $0xd8] sm:$0xff] }
  0x16   :  { %v180_v18 = vld [vmem:[#allocation2 + $0x3b0] sm:$0xff]  ;;  %219 = vmatpush.msra.mxu1 %v118_v15  ;;  %200 = vmatpush.msra.mxu0 %v84_v17  ;;  %v178_v22 = vld [vmem:[#allocation2 + $0x3a0] sm:$0xff]  ;;  %v123_v9 = vld [vmem:[#allocation2 + $0x1e8] sm:$0xff] }
  0x17   :  { %v116_v19 = vld [vmem:[#allocation2 + $0x1b0] sm:$0xff]  ;;  %v114_v23 = vld [vmem:[#allocation2 + $0x1a0] sm:$0xff]  ;;  %260 = vmatpush.msra.mxu3 %v180_v18  ;;  %241 = vmatpush.msra.mxu2 %v146_v20  ;;  %v151_v10 = vld [vmem:[#allocation2 + $0x2c8] sm:$0xff] }
  0x18   :  { %220 = vmatpush.msra.mxu1 %v116_v19  ;;  %v144_v24 = vld [vmem:[#allocation2 + $0x290] sm:$0xff]  ;;  %201 = vmatpush.msra.mxu0 %v82_v21  ;;  %v142_v28 = vld [vmem:[#allocation2 + $0x280] sm:$0xff]  ;;  %v185_v11 = vld [vmem:[#allocation2 + $0x3d8] sm:$0xff] }
  0x19   :  { %v80_v25 = vld [vmem:[#allocation2 + $0x90] sm:$0xff]  ;;  %261 = vmatpush.msra.mxu3 %v178_v22  ;;  %v78_v29 = vld [vmem:[#allocation2 + $0x80] sm:$0xff]  ;;  %242 = vmatpush.msra.mxu2 %v144_v24  ;;  %v87_v12 = vld [vmem:[#allocation2 + $0xc8] sm:$0xff] }
  0x1a   :  { %v176_v26 = vld [vmem:[#allocation2 + $0x390] sm:$0xff]  ;;  %221 = vmatpush.msra.mxu1 %v114_v23  ;;  %202 = vmatpush.msra.mxu0 %v80_v25  ;;  %v174_v30 = vld [vmem:[#allocation2 + $0x380] sm:$0xff]  ;;  %v121_v13 = vld [vmem:[#allocation2 + $0x1d8] sm:$0xff] }
  0x1b   :  { %v112_v27 = vld [vmem:[#allocation2 + $0x190] sm:$0xff]  ;;  %v110_v31 = vld [vmem:[#allocation2 + $0x180] sm:$0xff]  ;;  %262 = vmatpush.msra.mxu3 %v176_v26  ;;  %243 = vmatpush.msra.mxu2 %v142_v28  ;;  %v149_v14 = vld [vmem:[#allocation2 + $0x2b8] sm:$0xff] }
  0x1c   :  { %222 = vmatpush.msra.mxu1 %v112_v27  ;;  %v140_v32 = vld [vmem:[#allocation2 + $0x270] sm:$0xff]  ;;  %203 = vmatpush.msra.mxu0 %v78_v29  ;;  %v138_v36 = vld [vmem:[#allocation2 + $0x260] sm:$0xff]  ;;  %v183_v15 = vld [vmem:[#allocation2 + $0x3c8] sm:$0xff] }
  0x1d   :  { %v76_v33 = vld [vmem:[#allocation2 + $0x70] sm:$0xff]  ;;  %263 = vmatpush.msra.mxu3 %v174_v30  ;;  %v74_v37 = vld [vmem:[#allocation2 + $0x60] sm:$0xff]  ;;  %244 = vmatpush.msra.mxu2 %v140_v32  ;;  %v85_v16 = vld [vmem:[#allocation2 + $0xb8] sm:$0xff] }
  0x1e   :  { %v172_v34 = vld [vmem:[#allocation2 + $0x370] sm:$0xff]  ;;  %223 = vmatpush.msra.mxu1 %v110_v31  ;;  %204 = vmatpush.msra.mxu0 %v76_v33  ;;  %v170_v38 = vld [vmem:[#allocation2 + $0x360] sm:$0xff]  ;;  %v119_v17 = vld [vmem:[#allocation2 + $0x1c8] sm:$0xff] }
  0x1f   :  { %v108_v35 = vld [vmem:[#allocation2 + $0x170] sm:$0xff]  ;;  %v106_v39 = vld [vmem:[#allocation2 + $0x160] sm:$0xff]  ;;  %264 = vmatpush.msra.mxu3 %v172_v34  ;;  %245 = vmatpush.msra.mxu2 %v138_v36  ;;  %v147_v18 = vld [vmem:[#allocation2 + $0x2a8] sm:$0xff] }
  0x20   :  { %224 = vmatpush.msra.mxu1 %v108_v35  ;;  %v136_v40 = vld [vmem:[#allocation2 + $0x250] sm:$0xff]  ;;  %205 = vmatpush.msra.mxu0 %v74_v37  ;;  %v134_v44 = vld [vmem:[#allocation2 + $0x240] sm:$0xff]  ;;  %v181_v19 = vld [vmem:[#allocation2 + $0x3b8] sm:$0xff] }
  0x21   :  { %v72_v41 = vld [vmem:[#allocation2 + $0x50] sm:$0xff]  ;;  %265 = vmatpush.msra.mxu3 %v170_v38  ;;  %v70_v45 = vld [vmem:[#allocation2 + $0x40] sm:$0xff]  ;;  %246 = vmatpush.msra.mxu2 %v136_v40  ;;  %v83_v20 = vld [vmem:[#allocation2 + $0xa8] sm:$0xff] }
  0x22   :  { %v168_v42 = vld [vmem:[#allocation2 + $0x350] sm:$0xff]  ;;  %225 = vmatpush.msra.mxu1 %v106_v39  ;;  %206 = vmatpush.msra.mxu0 %v72_v41  ;;  %v166_v46 = vld [vmem:[#allocation2 + $0x340] sm:$0xff]  ;;  %v117_v21 = vld [vmem:[#allocation2 + $0x1b8] sm:$0xff] }
  0x23   :  { %v104_v43 = vld [vmem:[#allocation2 + $0x150] sm:$0xff]  ;;  %v102_v47 = vld [vmem:[#allocation2 + $0x140] sm:$0xff]  ;;  %266 = vmatpush.msra.mxu3 %v168_v42  ;;  %247 = vmatpush.msra.mxu2 %v134_v44  ;;  %v145_v22 = vld [vmem:[#allocation2 + $0x298] sm:$0xff] }
  0x24   :  { %226 = vmatpush.msra.mxu1 %v104_v43  ;;  %v132_v48 = vld [vmem:[#allocation2 + $0x230] sm:$0xff]  ;;  %207 = vmatpush.msra.mxu0 %v70_v45  ;;  %v130_v52 = vld [vmem:[#allocation2 + $0x220] sm:$0xff]  ;;  %v179_v23 = vld [vmem:[#allocation2 + $0x3a8] sm:$0xff] }
  0x25   :  { %v68_v49 = vld [vmem:[#allocation2 + $0x30] sm:$0xff]  ;;  %267 = vmatpush.msra.mxu3 %v166_v46  ;;  %v66_v53 = vld [vmem:[#allocation2 + $0x20] sm:$0xff]  ;;  %248 = vmatpush.msra.mxu2 %v132_v48  ;;  %v81_v24 = vld [vmem:[#allocation2 + $0x98] sm:$0xff] }
  0x26   :  { %v164_v50 = vld [vmem:[#allocation2 + $0x330] sm:$0xff]  ;;  %227 = vmatpush.msra.mxu1 %v102_v47  ;;  %208 = vmatpush.msra.mxu0 %v68_v49  ;;  %v162_v54 = vld [vmem:[#allocation2 + $0x320] sm:$0xff]  ;;  %v115_v25 = vld [vmem:[#allocation2 + $0x1a8] sm:$0xff] }
  0x27   :  { %v100_v51 = vld [vmem:[#allocation2 + $0x130] sm:$0xff]  ;;  %v98_v55 = vld [vmem:[#allocation2 + $0x120] sm:$0xff]  ;;  %268 = vmatpush.msra.mxu3 %v164_v50  ;;  %249 = vmatpush.msra.mxu2 %v130_v52  ;;  %v143_v26 = vld [vmem:[#allocation2 + $0x288] sm:$0xff] }
  0x28   :  { %228 = vmatpush.msra.mxu1 %v100_v51  ;;  %v128_v56 = vld [vmem:[#allocation2 + $0x210] sm:$0xff]  ;;  %209 = vmatpush.msra.mxu0 %v66_v53  ;;  %v126_v60 = vld [vmem:[#allocation2 + $0x200] sm:$0xff]  ;;  %v177_v27 = vld [vmem:[#allocation2 + $0x398] sm:$0xff] }
  0x29   :  { %v64_v57 = vld [vmem:[#allocation2 + $0x10] sm:$0xff]  ;;  %269 = vmatpush.msra.mxu3 %v162_v54  ;;  %v62_v61 = vld [vmem:[#allocation2] sm:$0xff]  ;;  %250 = vmatpush.msra.mxu2 %v128_v56  ;;  %v79_v28 = vld [vmem:[#allocation2 + $0x88] sm:$0xff] }
  0x2a   :  { %v160_v58 = vld [vmem:[#allocation2 + $0x310] sm:$0xff]  ;;  %229 = vmatpush.msra.mxu1 %v98_v55  ;;  %210 = vmatpush.msra.mxu0 %v64_v57  ;;  %v158_v63 = vld [vmem:[#allocation2 + $0x300] sm:$0xff]  ;;  %v113_v29 = vld [vmem:[#allocation2 + $0x198] sm:$0xff] }
  0x2b   :  { %v96_v59 = vld [vmem:[#allocation2 + $0x110] sm:$0xff]  ;;  %270 = vmatpush.msra.mxu3 %v160_v58  ;;  %251 = vmatpush.msra.mxu2 %v126_v60  ;;  %v94_v3 = vld [vmem:[#allocation2 + $0x100] sm:$0xff]  ;;  %v141_v30 = vld [vmem:[#allocation2 + $0x278] sm:$0xff] }
  0x2c   :  { %230 = vmatpush.msra.mxu1 %v96_v59  ;;  %211 = vmatpush.msra.mxu0 %v62_v61  ;;  %v175_v31 = vld [vmem:[#allocation2 + $0x388] sm:$0xff]  ;;  %v77_v32 = vld [vmem:[#allocation2 + $0x78] sm:$0xff]  ;;  %v60_v44 = vld [vmem:[%s714_s0 + $0x10] sm:$0xff] }
  0x2d   :  { %316 = vmatpush.msrb.mxu2 %v157_v62  ;;  %271 = vmatpush.msra.mxu3 %v158_v63  ;;  %v111_v33 = vld [vmem:[#allocation2 + $0x188] sm:$0xff]  ;;  %v173_v35 = vld [vmem:[#allocation2 + $0x378] sm:$0xff]  ;;  %v58_v49 = vld [vmem:[%s714_s0] sm:$0xff] }
  0x2e   :  { %276 = vmatpush.msrb.mxu0 %v93_v0  ;;  %231 = vmatpush.msra.mxu1 %v94_v3  ;;  %v139_v34 = vld [vmem:[#allocation2 + $0x268] sm:$0xff]  ;;  %v109_v37 = vld [vmem:[#allocation2 + $0x178] sm:$0xff] }
  0x2f   :  { %336 = vmatpush.msrb.mxu3 %v189_v1  ;;  %317 = vmatpush.msrb.mxu2 %v155_v2  ;;  %v75_v36 = vld [vmem:[#allocation2 + $0x68] sm:$0xff]  ;;  %v137_v38 = vld [vmem:[#allocation2 + $0x258] sm:$0xff] }
  0x30   :  { %277 = vmatpush.msrb.mxu0 %v91_v4  ;;  %296 = vmatpush.msrb.mxu1 %v125_v5  ;;  %v171_v39 = vld [vmem:[#allocation2 + $0x368] sm:$0xff]  ;;  %v73_v40 = vld [vmem:[#allocation2 + $0x58] sm:$0xff]  ;;  %v372_v5 = vld [vmem:[%s717_s3 + $0x70] sm:$0xff] }
  0x31   :  { %318 = vmatpush.msrb.mxu2 %v153_v6  ;;  %337 = vmatpush.msrb.mxu3 %v187_v7  ;;  %v107_v41 = vld [vmem:[#allocation2 + $0x168] sm:$0xff]  ;;  %v169_v43 = vld [vmem:[#allocation2 + $0x358] sm:$0xff] }
  0x32   :  { %278 = vmatpush.msrb.mxu0 %v89_v8  ;;  %297 = vmatpush.msrb.mxu1 %v123_v9  ;;  %v135_v42 = vld [vmem:[#allocation2 + $0x248] sm:$0xff]  ;;  %v105_v46 = vld [vmem:[#allocation2 + $0x158] sm:$0xff]  ;;  %v388_v8 = vld [vmem:[%s717_s3 + $0xf0] sm:$0xff] }
  0x33   :  { %319 = vmatpush.msrb.mxu2 %v151_v10  ;;  %338 = vmatpush.msrb.mxu3 %v185_v11  ;;  %v71_v45 = vld [vmem:[#allocation2 + $0x48] sm:$0xff]  ;;  %v133_v47 = vld [vmem:[#allocation2 + $0x238] sm:$0xff]  ;;  %v370_v9 = vld [vmem:[%s717_s3 + $0x60] sm:$0xff] }
  0x34   :  { %279 = vmatpush.msrb.mxu0 %v87_v12  ;;  %298 = vmatpush.msrb.mxu1 %v121_v13  ;;  %v167_v48 = vld [vmem:[#allocation2 + $0x348] sm:$0xff]  ;;  %v61_v50 = vld [vmem:[%s714_s0 + $0x18] sm:$0xff]  ;;  %v386_v12 = vld [vmem:[%s717_s3 + $0xe0] sm:$0xff] }
  0x35   :  { %320 = vmatpush.msrb.mxu2 %v149_v14  ;;  %339 = vmatpush.msrb.mxu3 %v183_v15  ;;  %v69_v51 = vld [vmem:[#allocation2 + $0x38] sm:$0xff]  ;;  %v103_v52 = vld [vmem:[#allocation2 + $0x148] sm:$0xff]  ;;  %v368_v13 = vld [vmem:[%s717_s3 + $0x50] sm:$0xff] }
  0x36   :  { %280 = vmatpush.msrb.mxu0 %v85_v16  ;;  %299 = vmatpush.msrb.mxu1 %v119_v17  ;;  %v131_v53 = vld [vmem:[#allocation2 + $0x228] sm:$0xff]  ;;  %v165_v54 = vld [vmem:[#allocation2 + $0x338] sm:$0xff]  ;;  %v384_v16 = vld [vmem:[%s717_s3 + $0xd0] sm:$0xff] }
  0x37   :  { %321 = vmatpush.msrb.mxu2 %v147_v18  ;;  %340 = vmatpush.msrb.mxu3 %v181_v19  ;;  %v59_v55 = vld [vmem:[%s714_s0 + $0x8] sm:$0xff]  ;;  %v101_v57 = vld [vmem:[#allocation2 + $0x138] sm:$0xff]  ;;  %v366_v17 = vld [vmem:[%s717_s3 + $0x40] sm:$0xff] }
  0x38   :  { %281 = vmatpush.msrb.mxu0 %v83_v20  ;;  %300 = vmatpush.msrb.mxu1 %v117_v21  ;;  %v67_v56 = vld [vmem:[#allocation2 + $0x28] sm:$0xff]  ;;  %v129_v58 = vld [vmem:[#allocation2 + $0x218] sm:$0xff]  ;;  %v364_v19 = vld [vmem:[%s717_s3 + $0x30] sm:$0xff] }
  0x39   :  { %322 = vmatpush.msrb.mxu2 %v145_v22  ;;  %341 = vmatpush.msrb.mxu3 %v179_v23  ;;  %v163_v59 = vld [vmem:[#allocation2 + $0x328] sm:$0xff]  ;;  %v65_v60 = vld [vmem:[#allocation2 + $0x18] sm:$0xff]  ;;  %v362_v22 = vld [vmem:[%s717_s3 + $0x20] sm:$0xff] }
  0x3a   :  { %282 = vmatpush.msrb.mxu0 %v81_v24  ;;  %301 = vmatpush.msrb.mxu1 %v115_v25  ;;  %v99_v61 = vld [vmem:[#allocation2 + $0x128] sm:$0xff]  ;;  %v161_v63 = vld [vmem:[#allocation2 + $0x318] sm:$0xff]  ;;  %v382_v23 = vld [vmem:[%s717_s3 + $0xc0] sm:$0xff] }
  0x3b   :  { %323 = vmatpush.msrb.mxu2 %v143_v26  ;;  %342 = vmatpush.msrb.mxu3 %v177_v27  ;;  %v127_v62 = vld [vmem:[#allocation2 + $0x208] sm:$0xff]  ;;  %v97_v1 = vld [vmem:[#allocation2 + $0x118] sm:$0xff]  ;;  %v360_v26 = vld [vmem:[%s717_s3 + $0x10] sm:$0xff] }
  0x3c   :  { %283 = vmatpush.msrb.mxu0 %v79_v28  ;;  %302 = vmatpush.msrb.mxu1 %v113_v29  ;;  %v63_v0 = vld [vmem:[#allocation2 + $0x8] sm:$0xff]  ;;  %v373_v4 = vld [vmem:[%s717_s3 + $0x78] sm:$0xff]  ;;  %v380_v27 = vld [vmem:[%s717_s3 + $0xb0] sm:$0xff] }
  0x3d   :  { %324 = vmatpush.msrb.mxu2 %v141_v30  ;;  %343 = vmatpush.msrb.mxu3 %v175_v31  ;;  %v159_v2 = vld [vmem:[#allocation2 + $0x308] sm:$0xff]  ;;  %v389_v6 = vld [vmem:[%s717_s3 + $0xf8] sm:$0xff]  ;;  %v358_v30 = vld [vmem:[%s717_s3] sm:$0xff] }
  0x3e   :  { %284 = vmatpush.msrb.mxu0 %v77_v32  ;;  %303 = vmatpush.msrb.mxu1 %v111_v33  ;;  %v95_v3 = vld [vmem:[#allocation2 + $0x108] sm:$0xff]  ;;  %v369_v11 = vld [vmem:[%s717_s3 + $0x58] sm:$0xff]  ;;  %v378_v31 = vld [vmem:[%s717_s3 + $0xa0] sm:$0xff] }
  0x3f   :  { %325 = vmatpush.msrb.mxu2 %v139_v34  ;;  %344 = vmatpush.msrb.mxu3 %v173_v35  ;;  %v371_v7 = vld [vmem:[%s717_s3 + $0x68] sm:$0xff]  ;;  %v385_v14 = vld [vmem:[%s717_s3 + $0xd8] sm:$0xff]  ;;  %v376_v33 = vld [vmem:[%s717_s3 + $0x90] sm:$0xff] }
  0x40   :  { %285 = vmatpush.msrb.mxu0 %v75_v36  ;;  %304 = vmatpush.msrb.mxu1 %v109_v37  ;;  %v387_v10 = vld [vmem:[%s717_s3 + $0xe8] sm:$0xff]  ;;  %v365_v18 = vld [vmem:[%s717_s3 + $0x38] sm:$0xff]  ;;  %v374_v35 = vld [vmem:[%s717_s3 + $0x80] sm:$0xff] }
  0x41   :  { %326 = vmatpush.msrb.mxu2 %v137_v38  ;;  %345 = vmatpush.msrb.mxu3 %v171_v39  ;;  %v367_v15 = vld [vmem:[%s717_s3 + $0x48] sm:$0xff]  ;;  %v361_v24 = vld [vmem:[%s717_s3 + $0x18] sm:$0xff]  ;;  %v449_v37 = vld [vmem:[#allocation4 + $0x70] sm:$0xff] }
  0x42   :  { %286 = vmatpush.msrb.mxu0 %v73_v40  ;;  %305 = vmatpush.msrb.mxu1 %v107_v41  ;;  %v363_v20 = vld [vmem:[%s717_s3 + $0x28] sm:$0xff]  ;;  %v381_v25 = vld [vmem:[%s717_s3 + $0xb8] sm:$0xff]  ;;  %v447_v39 = vld [vmem:[#allocation4 + $0x60] sm:$0xff] }
  0x43   :  { %327 = vmatpush.msrb.mxu2 %v135_v42  ;;  %346 = vmatpush.msrb.mxu3 %v169_v43  ;;  %v383_v21 = vld [vmem:[%s717_s3 + $0xc8] sm:$0xff]  ;;  %v377_v32 = vld [vmem:[%s717_s3 + $0x98] sm:$0xff]  ;;  %v190_v40 = vld [vmem:[%s716_s2] sm:$0x3] }
  0x44   :  { %252 = vmatmul.f32.vlgmr.msra.gmra.mxu2 %v60_v44  ;;  %287 = vmatpush.msrb.mxu0 %v71_v45  ;;  %v359_v28 = vld [vmem:[%s717_s3 + $0x8] sm:$0xff]  ;;  %v450_v36 = vld [vmem:[#allocation4 + $0x78] sm:$0xff]  ;;  %v192_v42 = vperm.slane %v190_v40, 0  ;;  %v445_v43 = vld [vmem:[#allocation4 + $0x50] sm:$0xff] }
  0x45   :  { %306 = vmatpush.msrb.mxu1 %v105_v46  ;;  %328 = vmatpush.msrb.mxu2 %v133_v47  ;;  %v379_v29 = vld [vmem:[%s717_s3 + $0xa8] sm:$0xff]  ;;  %v446_v41 = vld [vmem:[#allocation4 + $0x58] sm:$0xff]  ;;  %v443_v47 = vld [vmem:[#allocation4 + $0x40] sm:$0xff] }
  0x46   :  { %347 = vmatpush.msrb.mxu3 %v167_v48  ;;  %212 = vmatmul.f32.vlgmr.msra.gmra.mxu0 %v58_v49  ;;  %v375_v34 = vld [vmem:[%s717_s3 + $0x88] sm:$0xff] }
  0x47   :  { %272 = vmatmul.f32.vlgmr.msra.gmra.mxu3 %v61_v50  ;;  %288 = vmatpush.msrb.mxu0 %v69_v51  ;;  %v448_v38 = vld [vmem:[#allocation4 + $0x68] sm:$0xff] }
  0x48   :  { %307 = vmatpush.msrb.mxu1 %v103_v52  ;;  %329 = vmatpush.msrb.mxu2 %v131_v53 }
  0x49   :  { %348 = vmatpush.msrb.mxu3 %v165_v54  ;;  %232 = vmatmul.f32.vlgmr.msra.gmra.mxu1 %v59_v55  ;;  %v193_v54 = vperm.slane %v190_v40, 1 }
  0x4a   :  { %289 = vmatpush.msrb.mxu0 %v67_v56  ;;  %308 = vmatpush.msrb.mxu1 %v101_v57 }
  0x4b   :  { %330 = vmatpush.msrb.mxu2 %v129_v58  ;;  %349 = vmatpush.msrb.mxu3 %v163_v59 }
  0x4c   :  { %290 = vmatpush.msrb.mxu0 %v65_v60  ;;  %309 = vmatpush.msrb.mxu1 %v99_v61 }
  0x4d   :  { %331 = vmatpush.msrb.mxu2 %v127_v62  ;;  %350 = vmatpush.msrb.mxu3 %v161_v63 }
  0x4e   :  { %332 = vmatmul.f32.vlgmr.msrb.gmra.mxu2 %v60_v44  ;;  %291 = vmatpush.msrb.mxu0 %v63_v0  ;;  %v444_v44 = vld [vmem:[#allocation4 + $0x48] sm:$0xff] }
  0x4f   :  { %310 = vmatpush.msrb.mxu1 %v97_v1  ;;  %351 = vmatpush.msrb.mxu3 %v159_v2  ;;  %v441_v2 = vld [vmem:[#allocation4 + $0x30] sm:$0xff] }
  0x50   :  { %292 = vmatmul.f32.vlgmr.msrb.gmra.mxu0 %v58_v49  ;;  %352 = vmatmul.f32.vlgmr.msrb.gmra.mxu3 %v61_v50  ;;  %v442_v49 = vld [vmem:[#allocation4 + $0x38] sm:$0xff] }
  0x51   :  { %311 = vmatpush.msrb.mxu1 %v95_v3  ;;  %394 = vmatpush.msra.mxu0 %v373_v4  ;;  %v440_v3 = vld [vmem:[#allocation4 + $0x28] sm:$0xff]  ;;  %v439_v4 = vld [vmem:[#allocation4 + $0x20] sm:$0xff] }
  0x52   :  { %312 = vmatmul.f32.vlgmr.msrb.gmra.mxu1 %v59_v55  ;;  %455 = vmatpush.msra.mxu2 %v450_v36 }
  0x53   :  { %395 = vmatpush.msra.mxu0 %v372_v5  ;;  %414 = vmatpush.msra.mxu1 %v389_v6  ;;  %v438_v5 = vld [vmem:[#allocation4 + $0x18] sm:$0xff]  ;;  %v437_v6 = vld [vmem:[#allocation4 + $0x10] sm:$0xff] }
  0x54   :  { %456 = vmatpush.msra.mxu2 %v449_v37 }
  0x55   :  { %396 = vmatpush.msra.mxu0 %v371_v7  ;;  %415 = vmatpush.msra.mxu1 %v388_v8  ;;  %v436_v7 = vld [vmem:[#allocation4 + $0x8] sm:$0xff]  ;;  %v435_v8 = vld [vmem:[#allocation4] sm:$0xff] }
  0x56   :  { %457 = vmatpush.msra.mxu2 %v448_v38 }
  0x57   :  { %397 = vmatpush.msra.mxu0 %v370_v9  ;;  %416 = vmatpush.msra.mxu1 %v387_v10  ;;  %v488_v9 = vld [vmem:[%s718_s4] ss:$0 sm:$0xff] }
  0x58   :  { %458 = vmatpush.msra.mxu2 %v447_v39 }
  0x59   :  { %398 = vmatpush.msra.mxu0 %v369_v11  ;;  %417 = vmatpush.msra.mxu1 %v386_v12 }
  0x5a   :  { %459 = vmatpush.msra.mxu2 %v446_v41 }
  0x5b   :  { %399 = vmatpush.msra.mxu0 %v368_v13  ;;  %418 = vmatpush.msra.mxu1 %v385_v14 }
  0x5c   :  { %460 = vmatpush.msra.mxu2 %v445_v43 }
  0x5d   :  { %400 = vmatpush.msra.mxu0 %v367_v15  ;;  %419 = vmatpush.msra.mxu1 %v384_v16  ;;  %v489_v15 = vld [vmem:[%s720_s6] ss:$0 sm:$0xff] }
  0x5e   :  { %461 = vmatpush.msra.mxu2 %v444_v44 }
  0x5f   :  { %401 = vmatpush.msra.mxu0 %v366_v17  ;;  %420 = vmatpush.msra.mxu1 %v383_v21 }
  0x60   :  { %462 = vmatpush.msra.mxu2 %v443_v47 }
  0x61   :  { %402 = vmatpush.msra.mxu0 %v365_v18  ;;  %421 = vmatpush.msra.mxu1 %v382_v23 }
  0x62   :  { %463 = vmatpush.msra.mxu2 %v442_v49 }
  0x63   :  { %403 = vmatpush.msra.mxu0 %v364_v19  ;;  %422 = vmatpush.msra.mxu1 %v381_v25 }
  0x64   :  { %464 = vmatpush.msra.mxu2 %v441_v2 }
  0x65   :  { %404 = vmatpush.msra.mxu0 %v363_v20  ;;  %423 = vmatpush.msra.mxu1 %v380_v27 }
  0x66   :  { %465 = vmatpush.msra.mxu2 %v440_v3 }
  0x67   :  { %405 = vmatpush.msra.mxu0 %v362_v22  ;;  %424 = vmatpush.msra.mxu1 %v379_v29 }
  0x68   :  { %466 = vmatpush.msra.mxu2 %v439_v4 }
  0x69   :  { %406 = vmatpush.msra.mxu0 %v361_v24  ;;  %425 = vmatpush.msra.mxu1 %v378_v31 }
  0x6a   :  { %467 = vmatpush.msra.mxu2 %v438_v5 }
  0x6b   :  { %407 = vmatpush.msra.mxu0 %v360_v26  ;;  %426 = vmatpush.msra.mxu1 %v377_v32 }
  0x6c   :  { %468 = vmatpush.msra.mxu2 %v437_v6 }
  0x6d   :  { %408 = vmatpush.msra.mxu0 %v359_v28  ;;  %427 = vmatpush.msra.mxu1 %v376_v33 }
  0x6e   :  { %469 = vmatpush.msra.mxu2 %v436_v7 }
  0x6f   :  { %409 = vmatpush.msra.mxu0 %v358_v30  ;;  %428 = vmatpush.msra.mxu1 %v375_v34 }
  0x70   :  { %470 = vmatpush.msra.mxu2 %v435_v8 }
  0x71   :  { %429 = vmatpush.msra.mxu1 %v374_v35 }
  0xc3   :  { %v213_v45 = vpop.f32.mrf.mxu0 }
  0xc4   :  { %v214_v46 = vadd.f32 %v213_v45, %v192_v42 }
  0xc6   :  { %v233_v48 = vpop.f32.mrf.mxu1 }
  0xc7   :  { %v234_v50 = vadd.f32 %v233_v48, %v214_v46  ;;  %v253_v51 = vpop.f32.mrf.mxu2 }
  0xc9   :  { %v254_v52 = vadd.f32 %v253_v51, %v234_v50 }
  0xca   :  { %v273_v53 = vpop.f32.mrf.mxu3 }
  0xcb   :  { %v274_v55 = vadd.f32 %v273_v53, %v254_v52 }
  0xcd   :  { %v356_v56 = vmax.f32 %v274_v55, 0.0  ;;  %v293_v57 = vpop.f32.mrf.mxu0 }
  0xce   :  { %v294_v58 = vadd.f32 %v293_v57, %v193_v54 }
  0xcf   :  { %v313_v59 = vpop.f32.mrf.mxu1  ;;  %410 = vmatmul.f32.vlgmr.msra.gmra.mxu0 %v356_v56 }
  0xd0   :  { %v314_v60 = vadd.f32 %v313_v59, %v294_v58 }
  0xd1   :  { %v333_v61 = vpop.f32.mrf.mxu2 }
  0xd2   :  { %v334_v62 = vadd.f32 %v333_v61, %v314_v60 }
  0xd3   :  { %v353_v63 = vpop.f32.mrf.mxu3 }
  0xd4   :  { %v354_v0 = vadd.f32 %v353_v63, %v334_v62 }
  0xd6   :  { %v357_v1 = vmax.f32 %v354_v0, 0.0 }
  0xd8   :  { %430 = vmatmul.f32.vlgmr.msra.gmra.mxu1 %v357_v1 }
 0x14c   :  { %v411_v10 = vpop.f32.mrf.mxu0 }
 0x14d   :  { %v412_v11 = vadd.f32 %v488_v9, %v411_v10 }
 0x155   :  { %v431_v12 = vpop.f32.mrf.mxu1 }
 0x156   :  { %v432_v13 = vadd.f32 %v431_v12, %v412_v11 }
 0x158   :  { %v434_v14 = vmax.f32 %v432_v13, 0.0 }
 0x15a   :  { %471 = vmatmul.f32.vlgmr.msra.gmra.mxu2 %v434_v14 }
 0x1dd   :  { %v472_v16 = vpop.f32.mrf.mxu2 }
 0x1de   :  { %v473_v17 = vadd.f32 %v489_v15, %v472_v16 }
 0x1e0   :  { %475 = vst [vmem:[%s721_s7] sm:$0xff] %v473_v17 }
 0x1e1   :  { %480 = vsyncpa [#allocation3], 1 }
 0x1e2   :  { %481 = vsyncpa [#allocation5], 1 }

</bundles_post_ra>
